<compile_context>
chip_gen: v7x
topology: tpu7x:2x2x1
jax: 0.10.0
libtpu: 0.0.40
codegen_flags: <defaults>
</compile_context>

<pallas_src>
import jax
import jax.numpy as jnp
from jax.experimental import pallas as pl
from jax.experimental.pallas import tpu as pltpu


def _vmem_capacity_bytes():
    """Physical VMEM of the attached TPU; safe fallback if the query is unavailable."""
    try:
        return int(pltpu.get_tpu_info().vmem_capacity_bytes)
    except Exception:
        return 128 * 1024 * 1024  # v5e / v6e


def _pick_w_tile(h, w, c, elem_bytes, budget_bytes):
    """W-tile size: full W if a single-item (1, H, W*C) block fits the per-buffer budget,
    otherwise the largest divisor of W whose lane width (tw*c) is a multiple of 128
    (keeps the block legal under the (8,128) rule and the lanes fully utilized)."""
    if h * w * c * elem_bytes <= budget_bytes:
        return w
    cands = [tw for tw in range(1, w) if w % tw == 0 and (tw * c) % 128 == 0]
    fitting = [tw for tw in cands if h * tw * c * elem_bytes <= budget_bytes]
    if fitting:
        return max(fitting)
    if cands:
        return min(cands)  # smallest legal tile even if above budget
    # No 128-aligned divisor exists: fall back to the full-W block (acknowledged
    # robustness gap for pathological shapes; correct, may exceed the budget).
    return w


def _pick_batch_block(n, h, twc, elem_bytes, budget_bytes, grid_w,
                      min_steps=8, min_block_bytes=1 * 1024 * 1024):
    """Batch-block size: small enough to keep >= min_steps grid steps (DMA pipelining,
    v7x dual-TC), large enough (>= ~1 MiB when possible) to amortize per-step overhead,
    and always within the per-buffer VMEM budget."""
    divs = [d for d in range(1, n + 1) if n % d == 0]
    fitting = [d for d in divs if d * h * twc * elem_bytes <= budget_bytes] or [1]
    max_bn_for_steps = max(1, (n * grid_w) // min_steps)
    cands = [d for d in fitting if d <= max_bn_for_steps] or [min(fitting)]
    big_enough = [d for d in cands if d * h * twc * elem_bytes >= min_block_bytes]
    return min(big_enough) if big_enough else max(cands)


def _wce_partials_kernel(pred_ref, tgt_ref, out_ref):
    # pred_ref / tgt_ref: (BN, H, TW*C) blocks; TW*C is the lane (last) axis.
    pred_b = pred_ref[...].astype(jnp.float32)
    tgt_b = tgt_ref[...].astype(jnp.float32)   # bf16 ingest -> exact f32 (0/1 values)

    # log-sum-exp over axis=1 (H): literal reproduction of F.cross_entropy's dim=1
    # class-axis convention applied to NHWC tensors (matches the PyTorch module).
    m = jnp.max(pred_b, axis=1, keepdims=True)                              # (BN,1,TWC)
    lse = jnp.log(jnp.sum(jnp.exp(pred_b - m), axis=1, keepdims=True))      # (BN,1,TWC)

    s_tgt = jnp.sum(tgt_b, axis=1, keepdims=True)                           # (BN,1,TWC)
    s_tp = jnp.sum(tgt_b * pred_b, axis=1, keepdims=True)                   # (BN,1,TWC)

    # sum_H(-tgt * logp) = (m + lse) * sum_H(tgt) - sum_H(tgt * pred): logp never built.
    ce = jnp.sum((m + lse) * s_tgt - s_tp, axis=0, keepdims=True)           # (1,1,TWC)
    ts = jnp.sum(s_tgt, axis=0, keepdims=True)                              # (1,1,TWC)

    # Merged partials output: row 0 = CE partial, row 1 = target-sum partial.
    out_ref[:, 0:1, :] = ce
    out_ref[:, 1:2, :] = ts


def weighted_cross_entropy_loss(class_weights, pred, target, *,
                                target_bf16=True, pred_bf16=False):
    """class_weights: (C,), pred/target: (N, H, W, C). Returns scalar f32.

    target_bf16: ingest target as bf16 (exact for one-hot / 0-1 soft labels).
    pred_bf16:   ingest pred as bf16 (halves its HBM bytes; small documented numeric delta).
    """
    N, H, W, C = pred.shape
    WC = W * C

    # Per-generation VMEM budget.
    vmem_cap = _vmem_capacity_bytes()
    if vmem_cap <= 64 * 1024 * 1024:       # v7x: 64 MiB per TensorCore
        budget_bytes, vmem_limit = 2 * 1024 * 1024, 48 * 1024 * 1024
    else:                                   # v5e / v6e: 128 MiB
        budget_bytes, vmem_limit = 4 * 1024 * 1024, 32 * 1024 * 1024

    pred_dt = jnp.bfloat16 if pred_bf16 else jnp.float32
    pred_bytes = 2 if pred_bf16 else 4
    tgt_dt = jnp.bfloat16 if target_bf16 else jnp.float32

    # Lane-dense relayout: fold (W, C) into the lane-mapped last axis.
    pred_r = pred.reshape(N, H, WC).astype(pred_dt)
    tgt_r = target.reshape(N, H, WC).astype(tgt_dt)

    # Tiling: W-tile (for large images) then batch block (for pipelining depth).
    tw = _pick_w_tile(H, W, C, pred_bytes, budget_bytes)
    twc = tw * C
    grid_w = W // tw
    bn = _pick_batch_block(N, H, twc, pred_bytes, budget_bytes, grid_w)
    grid_n = N // bn

    part = pl.pallas_call(
        _wce_partials_kernel,
        out_shape=jax.ShapeDtypeStruct((grid_n, 2, WC), jnp.float32),
        grid_spec=pltpu.PrefetchScalarGridSpec(
            num_scalar_prefetch=0,
            grid=(grid_n, grid_w),
            in_specs=[
                pl.BlockSpec((bn, H, twc), lambda gn, gw: (gn, 0, gw)),   # pred
                pl.BlockSpec((bn, H, twc), lambda gn, gw: (gn, 0, gw)),   # target
            ],
            out_specs=pl.BlockSpec((1, 2, twc), lambda gn, gw: (gn, 0, gw)),
        ),
        compiler_params=pltpu.CompilerParams(
            dimension_semantics=("parallel", "parallel"),   # independent blocks -> megacore
            vmem_limit_bytes=vmem_limit,
        ),
    )(pred_r, tgt_r)

    # Tiny wrapper-side finalize: O(grid * W * C) work (reduce-then-weight).
    ce_part = part[:, 0, :]                                       # (grid_n, WC)
    ts_part = part[:, 1, :]                                       # (grid_n, WC)
    cw_tiled = jnp.tile(class_weights.astype(jnp.float32), W)     # (WC,), index w*C+c -> cw[c]

    ce_sum = jnp.sum(ce_part)
    w_sum = jnp.sum(jnp.sum(ts_part, axis=0) * cw_tiled)

    ce_mean = ce_sum / float(N * W * C)   # F.cross_entropy 'mean' denom (class dim=1 -> avg over N*W*C)
    w_mean = w_sum / float(N * H * W)     # torch.mean over the (N, H, W) weights tensor
    return ce_mean * w_mean


def reference(class_weights, pred, target):
    """Pure-JAX mirror of the literal PyTorch forward."""
    logp = jax.nn.log_softmax(pred, axis=1)
    ce = jnp.mean(jnp.sum(-target * logp, axis=1))          # F.cross_entropy, soft targets
    weights = jnp.sum(class_weights * target, axis=3)       # (N, H, W)
    return ce * jnp.mean(weights)


if __name__ == "__main__":
    key = jax.random.PRNGKey(0)
    N, H, W, C = 2, 8, 8, 4

    k1, k2 = jax.random.split(key)
    pred = jax.random.normal(k1, (N, H, W, C), dtype=jnp.float32)
    labels = jax.random.randint(k2, (N, H, W), 0, C)
    target = jax.nn.one_hot(labels, C, dtype=jnp.float32)   # one-hot over class dim (dim 3)
    class_weights = jnp.array([0.5, 1.0, 1.5, 2.0], dtype=jnp.float32)

    out = weighted_cross_entropy_loss(class_weights, pred, target)
    out = jax.block_until_ready(out)

    ref = reference(class_weights, pred, target)
    assert jnp.allclose(out, ref, rtol=1e-5, atol=1e-5), (out, ref)
    print("KERNEL_OK")
</pallas_src>

<mosaic_0001>
module attributes {stable_mosaic.version = 11 : i64} {
  func.func @_wce_partials_kernel(%arg0: i32, %arg1: i32, %arg2: memref<1x8x32xf32, #tpu.memory_space<vmem>>, %arg3: memref<1x8x32xbf16, #tpu.memory_space<vmem>>, %arg4: memref<1x2x32xf32, #tpu.memory_space<vmem>>) attributes {dimension_semantics = [#tpu.dimension_semantics<parallel>, #tpu.dimension_semantics<parallel>], iteration_bounds = array<i64: 2, 1>, scalar_prefetch = 0 : i64, scratch_operands = 0 : i64, tpu.core_type = #tpu.core_type<tc>, window_params = [{transform_indices = @transform_0, window_bounds = array<i64: 1, 8, 32>}, {transform_indices = @transform_1, window_bounds = array<i64: 1, 8, 32>}, {transform_indices = @transform_2, window_bounds = array<i64: 1, 2, 32>}]} {
    %c0 = arith.constant 0 : index
    %c0_0 = arith.constant 0 : index
    %c0_1 = arith.constant 0 : index
    %0 = vector.load %arg2[%c0, %c0_0, %c0_1] : memref<1x8x32xf32, #tpu.memory_space<vmem>>, vector<1x8x32xf32>
    %c0_2 = arith.constant 0 : index
    %c0_3 = arith.constant 0 : index
    %c0_4 = arith.constant 0 : index
    %1 = vector.load %arg3[%c0_2, %c0_3, %c0_4] : memref<1x8x32xbf16, #tpu.memory_space<vmem>>, vector<1x8x32xbf16>
    %2 = arith.extf %1 : vector<1x8x32xbf16> to vector<1x8x32xf32>
    %cst = arith.constant dense<0xFF800000> : vector<1x32xf32>
    %3 = vector.multi_reduction <maximumf>, %0, %cst [1] : vector<1x8x32xf32> to vector<1x32xf32>
    %4 = vector.shape_cast %3 : vector<1x32xf32> to vector<1x1x32xf32>
    %5 = vector.broadcast %4 : vector<1x1x32xf32> to vector<1x8x32xf32>
    %6 = arith.subf %0, %5 : vector<1x8x32xf32>
    %7 = math.exp %6 : vector<1x8x32xf32>
    %cst_5 = arith.constant dense<0.000000e+00> : vector<1x32xf32>
    %8 = vector.multi_reduction <add>, %7, %cst_5 [1] : vector<1x8x32xf32> to vector<1x32xf32>
    %9 = vector.shape_cast %8 : vector<1x32xf32> to vector<1x1x32xf32>
    %10 = math.log %9 : vector<1x1x32xf32>
    %cst_6 = arith.constant dense<0.000000e+00> : vector<1x32xf32>
    %11 = vector.multi_reduction <add>, %2, %cst_6 [1] : vector<1x8x32xf32> to vector<1x32xf32>
    %12 = vector.shape_cast %11 : vector<1x32xf32> to vector<1x1x32xf32>
    %13 = arith.mulf %2, %0 : vector<1x8x32xf32>
    %cst_7 = arith.constant dense<0.000000e+00> : vector<1x32xf32>
    %14 = vector.multi_reduction <add>, %13, %cst_7 [1] : vector<1x8x32xf32> to vector<1x32xf32>
    %15 = vector.shape_cast %14 : vector<1x32xf32> to vector<1x1x32xf32>
    %16 = arith.addf %4, %10 : vector<1x1x32xf32>
    %17 = arith.mulf %16, %12 : vector<1x1x32xf32>
    %18 = arith.subf %17, %15 : vector<1x1x32xf32>
    %cst_8 = arith.constant dense<0.000000e+00> : vector<1x32xf32>
    %19 = vector.multi_reduction <add>, %18, %cst_8 [0] : vector<1x1x32xf32> to vector<1x32xf32>
    %20 = vector.shape_cast %19 : vector<1x32xf32> to vector<1x1x32xf32>
    %cst_9 = arith.constant dense<0.000000e+00> : vector<1x32xf32>
    %21 = vector.multi_reduction <add>, %12, %cst_9 [0] : vector<1x1x32xf32> to vector<1x32xf32>
    %22 = vector.shape_cast %21 : vector<1x32xf32> to vector<1x1x32xf32>
    %c0_10 = arith.constant 0 : index
    %c0_11 = arith.constant 0 : index
    %c0_12 = arith.constant 0 : index
    %23 = vector.load %arg4[%c0_10, %c0_11, %c0_12] : memref<1x2x32xf32, #tpu.memory_space<vmem>>, vector<1x1x32xf32>
    tpu.vector_store %arg4[%c0_10, %c0_11, %c0_12], %20 {strides = array<i32>} : memref<1x2x32xf32, #tpu.memory_space<vmem>>, vector<1x1x32xf32>,
    %c0_13 = arith.constant 0 : index
    %c1 = arith.constant 1 : index
    %c0_14 = arith.constant 0 : index
    %24 = vector.load %arg4[%c0_13, %c1, %c0_14] : memref<1x2x32xf32, #tpu.memory_space<vmem>>, vector<1x1x32xf32>
    tpu.vector_store %arg4[%c0_13, %c1, %c0_14], %22 {strides = array<i32>} : memref<1x2x32xf32, #tpu.memory_space<vmem>>, vector<1x1x32xf32>,
    return
  }
  func.func @transform_0(%arg0: i32, %arg1: i32) -> (i32, i32, i32) {
    %c0_i32 = arith.constant 0 : i32
    %c0_i32_0 = arith.constant 0 : i32
    return %arg0, %c0_i32, %arg1 : i32, i32, i32
  }
  func.func @transform_1(%arg0: i32, %arg1: i32) -> (i32, i32, i32) {
    %c0_i32 = arith.constant 0 : i32
    %c0_i32_0 = arith.constant 0 : i32
    return %arg0, %c0_i32, %arg1 : i32, i32, i32
  }
  func.func @transform_2(%arg0: i32, %arg1: i32) -> (i32, i32, i32) {
    %c0_i32 = arith.constant 0 : i32
    %c0_i32_0 = arith.constant 0 : i32
    return %arg0, %c0_i32, %arg1 : i32, i32, i32
  }
}

</mosaic_0001>

<bundles_post_ra>
// kernel: tpu_custom_call.1
= control target key start
LH: loop header
LB: loop body
LE: loop exit
PB: predicated region body
PF: predicated region fallthrough
CT: control target
= control target key end

     0   :  { %7 = vsyncpa [#allocation3], 0  ;;  %s861_s0 = inlined_call_operand.hbm [shape: f32[2,8,32], index: 0, kind: input, shape index: {}]   ;;  %s862_s1 = inlined_call_operand.hbm [shape: bf16[2,8,32], index: 1, kind: input, shape index: {}]   ;;  %s863_s2 = inlined_call_operand.hbm [shape: f32[2,2,32], index: 2, kind: output, shape index: {}]  }
   0x1   :  { %9 = vsyncpa [#allocation3 + $0x1], 0 }
   0x2   :  { %10 = vsyncpa [#allocation6], 0 }
   0x3   :  { %12 = vsyncpa [#allocation6 + $0x1], 0 }
   0x4   :  { %13 = vsyncpa [#allocation4], 0 }
   0x5   :  { %15 = vsyncpa [#allocation4 + $0x1], 0  ;;  %s634_s9 = smov 0   ;;  %s636_s10 = smov 0  }
   0x6   :  { %s638_s11 = smov 0   ;;  %s640_s12 = smov 0  }
   0x7   :  { %s642_s13 = smov 0   ;;  %s644_s14 = smov 0  }
   0x8 LB: > { %s381_s15 = sadd.s32 4294967295, %s614_s14   ;;  %s382_s16 = sadd.s32 4294967294, %s614_s14   ;;  %s614_s14 = sphi %s644_s14, %s21_s14   ;;  %s610_s13 = sphi %s642_s13, %s883_s13   ;;  %s606_s12 = sphi %s640_s12, %s882_s12   ;;  %s602_s11 = sphi %s638_s11, %s881_s11   ;;  %s598_s10 = sphi %s636_s10, %s880_s10   ;;  %s594_s9 = sphi %s634_s9, %s879_s9  }
   0x9   : > { %s33_s17 = sadd.s32 1, %s610_s13  ;;  %s42_s18 = sadd.s32 1, %s602_s11 }
   0xa   : > { %p35_p0 = scmp.ge.s32.totalorder %s33_s17, 2  ;;  %p49_p1 = scmp.ne.s32.totalorder %s602_s11, %s598_s10 }
   0xb   : > { %p50_p2 = scmp.eq.s32.totalorder %s614_s14, 0  ;;  %p55_p3 = scmp.ne.s32.totalorder %s598_s10, %s594_s9 }
   0xc   : > { %s885_s17 = smov (%p35_p0, %s33_s17), 0  ;;  %p56_p5 = scmp.eq.s32.totalorder %s381_s15, 0 }
   0xd   : > { %p675_p4 = por %p50_p2, %p49_p1  ;;  %s37_s20 = ssub.s32 %s610_s13, %s885_s17 }
   0xe   : > { %p109_p6 = scmp.eq.s32.totalorder %s381_s15, 1  ;;  %p40_p7 = scmp.eq.s32.totalorder %s37_s20, 0 }
   0xf   : > { %p681_p8 = por %p56_p5, %p55_p3  ;;  %p115_p10 = scmp.eq.s32.totalorder %s382_s16, 1 }
  0x10   : > { %p685_p9 = por %p109_p6, %p49_p1  ;;  %p414_p13 = scmp.lt.s32.totalorder %s614_s14, 2 }
  0x11   : > { %s867_s21 = scalar_select %p681_p8, 1, 0 }
  0x12   : > { %s868_s22 = scalar_select %p685_p9, 1, 0 }
  0x13   : > { %s690_s23 = scalar_select %p40_p7, %s602_s11, %s42_s18  }
  0x14   : > { %p692_p11 = por %p115_p10, %p55_p3  ;;  %s699_s25 = sand.u32 1, %s602_s11  }
  0x15   : > { %s385_s26 = sshll.u32 %s699_s25, 3  ;;  %s386_s27 = sshll.u32 %s610_s13, 7 }
  0x16   : > { %s869_s24 = scalar_select %p692_p11, 1, 0 }
  0x17   : > { %s706_s30 = scalar_lea.hbm %s861_s0, %s386_s27  ;;  %s139_s3 = scalar_lea.vmem [#allocation2], %s385_s26 }
  0x18   : > { %s147_s4 = sshll.u32 %s139_s3, 4  ;;  %p712_p0 = pnand %p414_p13, %p675_p4  ;;  %s708_s4 = int_to_ptr.vmem [resolvable:$true] %s147_s4 }
  0x19   : > { %s136_s6 = scalar_lea.sflag [#allocation3], %s699_s25  ;;  %s468_s7 = scalar_lea.hbm %s706_s30, 128 }
  0x1a   : > { %p469_p3 = scmp.ne.s32.totalorder %s706_s30, %s468_s7  ;;  %p470_p5 = pneg %p712_p0 }
  0x1b   : > { %s473_s16 = scalar_lea.hbm %s861_s0, 256  ;;  %p474_p4 = scmp.lt.u32.totalorder %s706_s30, %s861_s0 }
  0x1c   : > { %p471_p6 = pnand %p470_p5, %p469_p3  ;;  %p475_p10 = scmp.lt.u32.totalorder %s473_s16, %s468_s7 }
  0x1d   : > { %p477_p12 = scmp.lt.u32.totalorder %s468_s7, %s706_s30 }
  0x1e   : > { %p472_p7 = pneg %p471_p6  ;;  %p476_p13 = por %p475_p10, %p474_p4 }
  0x20   : > { %p478_p1 = por %p477_p12, %p476_p13 }
  0x22   : > { %p479_p2 = pnand %p478_p1, %p472_p7 }
  0x24   : > { %482 = shalt.err (!%p479_p2)
}
  0x25   : > { %s483_s20 = scalar_lea.vmem %s708_s4, 128  ;;  %s616_s26 = smov [#allocation2]  }
  0x26   : > { %p484_p3 = scmp.ne.s32.totalorder %s708_s4, %s483_s20  ;;  %s488_s27 = sshll.u32 %s616_s26, 4  ;;  %s489_s27 = int_to_ptr.vmem [resolvable:$false] %s488_s27 }
  0x27   : > { %s490_s28 = scalar_lea.vmem %s489_s27, 256  ;;  %p491_p9 = scmp.lt.s32.totalorder %s708_s4, %s489_s27 }
  0x28   : > { %p486_p6 = pnand %p484_p3, %p470_p5  ;;  %p492_p4 = scmp.lt.s32.totalorder %s490_s28, %s483_s20 }
  0x2a   : > { %p487_p11 = pneg %p486_p6  ;;  %p493_p10 = por %p492_p4, %p491_p9 }
  0x2c   : > { %p494_p12 = pnand %p493_p10, %p487_p11 }
  0x2e   : > { %497 = shalt.err (!%p494_p12)
}
  0x2f   : > { %406 = dma.hbm_to_vmem [thread:$0]  (!%p712_p0), %s706_s30, 128, %s708_s4, %s136_s6  }
  0x30   : > { %p871_p1 = scmp.lt.s32.totalorder %s614_s14, 3  ;;  %p872_p2 = scmp.ge.s32.totalorder %s614_s14, 1 }
  0x31   : > { %s387_s3 = sshll.u32 %s699_s25, 2  ;;  %s388_s7 = sshll.u32 %s610_s13, 6 }
  0x32   : > { %p748_p7 = pnand %p872_p2, %p871_p1  ;;  %s757_s16 = scalar_lea.hbm %s862_s1, %s388_s7 }
  0x33   : > { %s158_s18 = scalar_lea.vmem [#allocation5], %s387_s3  ;;  %s155_s30 = scalar_lea.sflag [#allocation6], %s699_s25 }
  0x34   : > { %s873_s29 = scalar_select %p748_p7, 1, 0 }
  0x35   : > { %s166_s19 = sshll.u32 %s158_s18, 4  ;;  %s498_s4 = scalar_lea.hbm %s757_s16, 64  ;;  %s167_s19 = int_to_ptr.vmem [resolvable:$true] %s166_s19 }
  0x36   : > { %p499_p9 = scmp.ne.s32.totalorder %s757_s16, %s498_s4  ;;  %s503_s26 = scalar_lea.hbm %s862_s1, 128 }
  0x37   : > { %p504_p3 = scmp.lt.u32.totalorder %s757_s16, %s862_s1  ;;  %p505_p6 = scmp.lt.u32.totalorder %s503_s26, %s498_s4 }
  0x38   : > { %p501_p11 = pnand %p499_p9, %p470_p5  ;;  %p507_p10 = scmp.lt.u32.totalorder %s498_s4, %s757_s16 }
  0x39   : > { %p506_p4 = por %p505_p6, %p504_p3 }
  0x3a   : > { %p502_p13 = pneg %p501_p11 }
  0x3b   : > { %p508_p12 = por %p507_p10, %p506_p4 }
  0x3d   : > { %p509_p1 = pnand %p508_p12, %p502_p13 }
  0x3f   : > { %512 = shalt.err (!%p509_p1)
}
  0x40   : > { %s513_s25 = scalar_lea.vmem %s167_s19, 64  ;;  %s617_s3 = smov [#allocation5]  }
  0x41   : > { %p514_p2 = scmp.ne.s32.totalorder %s167_s19, %s513_s25  ;;  %s518_s7 = sshll.u32 %s617_s3, 4  ;;  %s519_s7 = int_to_ptr.vmem [resolvable:$false] %s518_s7 }
  0x42   : > { %s520_s8 = scalar_lea.vmem %s519_s7, 128  ;;  %p521_p8 = scmp.lt.s32.totalorder %s167_s19, %s519_s7 }
  0x43   : > { %p516_p9 = pnand %p514_p2, %p470_p5  ;;  %p522_p7 = scmp.lt.s32.totalorder %s520_s8, %s513_s25 }
  0x45   : > { %p517_p11 = pneg %p516_p9  ;;  %p523_p3 = por %p522_p7, %p521_p8 }
  0x47   : > { %p524_p6 = pnand %p523_p3, %p517_p11 }
  0x49   : > { %527 = shalt.err (!%p524_p6)
}
  0x4a   : > { %409 = dma.hbm_to_vmem [thread:$0]  (!%p712_p0), %s757_s16, 64, %s167_s19, %s155_s30  }
  0x4b   : > { %p874_p13 = scmp.ne.s32.totalorder %s873_s29, 0 }
  0x4c   : > { %s782_s15 = sand.u32 (!%p874_p13), 1, %s598_s10   ;;  %p875_p5 = scmp.ne.s32.totalorder (!%p874_p13), %s867_s21, 0 }
  0x4d   : > { %175 = sbr.rel (%p874_p13) target bundleno = 163 (0xa3), region = 28  ;;  %s390_s18 = sshll.u32 (!%p874_p13), %s782_s15, 3 }
  0x4e   : > { %s178_s4 = scalar_lea.sflag (!%p874_p13), [#allocation3], %s782_s15  ;;  %s181_s6 = scalar_lea.vmem (!%p874_p13), [#allocation2], %s390_s18 }
  0x54   : > { %581 = dma.done.wait (%p875_p5), %s178_s4, 128  }
  0x55   : > { %583 = vsyncadd (%p875_p5), %s178_s4, 4294967168  ;;  %s391_s5 = sshll.u32 %s782_s15, 2  ;;  %s187_s29 = scalar_lea.sflag [#allocation6], %s782_s15 }
  0x56   : > { %s190_s16 = scalar_lea.vmem [#allocation5], %s391_s5 }
  0x57   : > { %585 = dma.done.wait (%p875_p5), %s187_s29, 64  }
  0x58   : > { %587 = vsyncadd (%p875_p5), %s187_s29, 4294967232  ;;  %vm219_vm0 = vcmask 261120   ;;  %v216_v0 = vld [vmem:[%s181_s6] sm:$0xff]  ;;  %v217_v1 = vld [vmem:[%s190_s16] sm:$0xf]  ;;  %s392_s19 = sshll.u32 %s782_s15, 1 }
  0x59   : > { %v218_v2 = vunpack.c.l.bf16 %v217_v1  ;;  %v220_v3 = vsel %vm219_vm0, %v216_v0, -inf  ;;  %vm259_vm1 = vcmask 253952   ;;  %s799_s21 = scalar_lea.vmem [#allocation7], %s392_s19  ;;  %s394_s20 = sshll.u32 %s606_s12, 5 }
  0x5a   : > { %v221_v4 = vrot.slane %v220_v3, 4  ;;  %s277_s30 = sshll.u32 %s799_s21, 4  ;;  %s812_s28 = scalar_lea.hbm %s863_s2, %s394_s20  ;;  %s807_s30 = int_to_ptr.vmem [resolvable:$true] %s277_s30 }
  0x5b   : > { %v239_v5 = vsel %vm219_vm0, %v218_v2, 0.0  ;;  %v246_v20 = vmul.f32 %v218_v2, %v216_v0  ;;  %s263_s25 = scalar_lea.sflag [#allocation4], %s782_s15  ;;  %s528_s3 = scalar_lea.vmem %s807_s30, 32 }
  0x5c   : > { %v222_v6 = vmax.f32 %v220_v3, %v221_v4  ;;  %v240_v7 = vrot.slane %v239_v5, 4  ;;  %p529_p8 = scmp.ne.s32.totalorder %s807_s30, %s528_s3  ;;  %p876_p0 = scmp.ne.s32.totalorder %s868_s22, 0 }
  0x5d   : > { %v247_v24 = vsel %vm219_vm0, %v246_v20, 0.0  ;;  %s618_s12 = smov [#allocation7]  }
  0x5e   : > { %v223_v8 = vrot.slane %v222_v6, 2  ;;  %v241_v9 = vadd.f32 %v240_v7, %v239_v5  ;;  %v248_v26 = vrot.slane %v247_v24, 4  ;;  %p530_p7 = pnand %p529_p8, %p876_p0  ;;  %s532_s7 = sshll.u32 %s618_s12, 4  ;;  %s533_s7 = int_to_ptr.vmem [resolvable:$false] %s532_s7 }
  0x5f   : > { %s534_s8 = scalar_lea.vmem %s533_s7, 64  ;;  %p535_p10 = scmp.lt.s32.totalorder %s807_s30, %s533_s7 }
  0x60   : > { %v224_v10 = vmax.f32 %v222_v6, %v223_v8  ;;  %v242_v11 = vrot.slane %v241_v9, 2  ;;  %v249_v29 = vadd.f32 %v248_v26, %v247_v24  ;;  %p531_p4 = pneg %p530_p7  ;;  %p536_p12 = scmp.lt.s32.totalorder %s534_s8, %s528_s3 }
  0x62   : > { %v225_v12 = vrot.slane %v224_v10, 1  ;;  %v243_v13 = vadd.f32 %v242_v11, %v241_v9  ;;  %v250_v31 = vrot.slane %v249_v29, 2  ;;  %p537_p1 = por %p536_p12, %p535_p10 }
  0x64   : > { %v226_v14 = vmax.f32 %v224_v10, %v225_v12  ;;  %v244_v15 = vrot.slane %v243_v13, 1  ;;  %v251_v32 = vadd.f32 %v250_v31, %v249_v29  ;;  %p538_p2 = pnand %p537_p1, %p531_p4 }
  0x66   : > { %v227_v16 = vsub.f32 %v216_v0, %v226_v14  ;;  %v245_v17 = vadd.f32 %v244_v15, %v243_v13  ;;  %v252_v33 = vrot.slane %v251_v32, 1 }
  0x68   : > { %v228_v18 = vmul.f32 1.442695, %v227_v16  ;;  %261 = vst.msk [vmem:[%s799_s21 + $0x1] sm:$0x1] %vm259_vm1, %v245_v17  ;;  %v253_v36 = vadd.f32 %v252_v33, %v251_v32 }
  0x6a   : > { %464 = vpow2.f32 %v228_v18 }
  0x74   : > { %v465_v19 = vpop.eup %464 }
  0x75   : > { %v230_v21 = vsel %vm219_vm0, %v465_v19, 0.0 }
  0x76   : > { %v231_v22 = vrot.slane %v230_v21, 4 }
  0x78   : > { %v232_v23 = vadd.f32 %v231_v22, %v230_v21 }
  0x7a   : > { %v233_v25 = vrot.slane %v232_v23, 2 }
  0x7c   : > { %v234_v27 = vadd.f32 %v233_v25, %v232_v23 }
  0x7e   : > { %v235_v28 = vrot.slane %v234_v27, 1 }
  0x80   : > { %v236_v30 = vadd.f32 %v235_v28, %v234_v27 }
  0x82   : > { %466 = vlog2.f32 %v236_v30 }
  0x8c   : > { %v467_v34 = vpop.eup %466 }
  0x8d   : > { %v238_v35 = vmul.f32 0.6931472, %v467_v34 }
  0x8f   : > { %v254_v37 = vadd.f32 %v238_v35, %v226_v14 }
  0x91   : > { %v255_v38 = vmul.f32 %v254_v37, %v245_v17 }
  0x93   : > { %v256_v39 = vsub.f32 %v255_v38, %v253_v36 }
  0x95   : > { %260 = vst.msk [vmem:[%s799_s21] sm:$0x1] %vm259_vm1, %v256_v39 }
  0x96   : > { %541 = shalt.err (!%p538_p2)
}
  0x97   : > { %s542_s15 = scalar_lea.hbm %s812_s28, 32  ;;  %s546_s6 = scalar_lea.hbm %s863_s2, 64 }
  0x98   : > { %p543_p9 = scmp.ne.s32.totalorder %s812_s28, %s542_s15  ;;  %p547_p6 = scmp.lt.u32.totalorder %s812_s28, %s863_s2 }
  0x99   : > { %p548_p13 = scmp.lt.u32.totalorder %s546_s6, %s542_s15  ;;  %p550_p8 = scmp.lt.u32.totalorder %s542_s15, %s812_s28 }
  0x9a   : > { %p544_p11 = pnand %p543_p9, %p876_p0 }
  0x9b   : > { %p549_p5 = por %p548_p13, %p547_p6 }
  0x9c   : > { %p545_p3 = pneg %p544_p11 }
  0x9d   : > { %p551_p7 = por %p550_p8, %p549_p5 }
  0x9f   : > { %p552_p4 = pnand %p551_p7, %p545_p3 }
  0xa1   : > { %555 = shalt.err (!%p552_p4)
}
  0xa2   : > { %401 = dma.vmem_to_hbm [thread:$0]  (%p876_p0), %s807_s30, 32, %s812_s28, %s263_s25  }
  0xa3 PF: > { %s289_s16 = sand.u32 1, %s594_s9   ;;  %p877_p10 = scmp.ne.s32.totalorder %s869_s24, 0 }
  0xa4   : > { %p878_p12 = scmp.ge.s32.totalorder %s614_s14, 2  ;;  %s290_s19 = scalar_lea.sflag [#allocation4], %s289_s16 }
  0xa6   : > { %p411_p1 = pnand %p878_p12, %p877_p10 }
  0xa8   : > { %589 = dma.done.wait (!%p411_p1), %s290_s19, 32  }
  0xa9   : > { %591 = vsyncadd (!%p411_p1), %s290_s19, 4294967264  ;;  %s21_s14 = sadd.s32 1, %s614_s14   ;;  %s879_s9 = smov %s598_s10 }
  0xaa   : > { %p18_p2 = scmp.ge.s32.totalorder %s21_s14, 4   ;;  %s880_s10 = smov %s602_s11 }
  0xab   : > { %s881_s11 = smov %s690_s23  ;;  %s882_s12 = smov %s610_s13 }
  0xac   : > { %s883_s13 = smov %s885_s17  ;;  %20 = sbr.rel (!%p18_p2) target bundleno = 8 (0x8), region = 86 }
  0xb3   :  { %295 = vsyncpa [#allocation3], 1 }
  0xb4   :  { %297 = vsyncpa [#allocation3 + $0x1], 1 }
  0xb5   :  { %298 = vsyncpa [#allocation6], 1 }
  0xb6   :  { %300 = vsyncpa [#allocation6 + $0x1], 1 }
  0xb7   :  { %301 = vsyncpa [#allocation4], 1 }
  0xb8   :  { %303 = vsyncpa [#allocation4 + $0x1], 1 }

</bundles_post_ra>
